<compile_context>
chip_gen: v7x
topology: tpu7x:2x2x1
jax: 0.10.0
libtpu: 0.0.40
codegen_flags: <defaults>
</compile_context>

<pallas_src>
import jax
import jax.numpy as jnp
from jax.experimental import pallas as pl
from jax.experimental.pallas import tpu as pltpu


def _round_up(x, m):
    return ((x + m - 1) // m) * m


def _pos_emb_kernel_aligned(pos_ref, freq_ref, out_ref):
    # pos_ref:  (TL, 1)    f32  positions column for this tile
    # freq_ref: (1, H)     f32  inverse frequencies (resident across grid)
    # out_ref:  (TL, 2*H)  out_dtype, H % 128 == 0 -> lane-aligned half stores
    H = freq_ref.shape[1]
    # Recompute the outer product per half (no shared (TL, H) VMEM temporary).
    out_ref[:, :H] = jnp.sin(pos_ref[...] * freq_ref[...]).astype(out_ref.dtype)
    out_ref[:, H:] = jnp.cos(pos_ref[...] * freq_ref[...]).astype(out_ref.dtype)


def _pos_emb_kernel_padded(pos_ref, freq_ref, out_ref):
    # pos_ref:  (TL, 1)         f32
    # freq_ref: (1, H_pad)      f32 (zero-padded lanes beyond H)
    # out_ref:  (2, TL, H_pad)  out_dtype; [0]=sin, [1]=cos, both lane-dense
    out_ref[0] = jnp.sin(pos_ref[...] * freq_ref[...]).astype(out_ref.dtype)
    out_ref[1] = jnp.cos(pos_ref[...] * freq_ref[...]).astype(out_ref.dtype)


def positional_embedding(pos_seq, inv_freq, bsz=None, out_dtype=None):
    """JAX/Pallas equivalent of PositionalEmbedding.forward.

    pos_seq : (L,)       float positions
    inv_freq: (demb//2,) float inverse frequencies (module buffer)
    out_dtype: output dtype; default = pos_seq.dtype (matches PyTorch).  Pass
               jnp.bfloat16 to halve HBM writeback; math stays in f32.
    returns : (L, 1, demb) or (L, bsz, demb)
    """
    L = int(pos_seq.shape[0])
    H = int(inv_freq.shape[0])
    demb = 2 * H
    assert H >= 1, "inv_freq must be non-empty"

    if out_dtype is None:
        out_dtype = pos_seq.dtype
    out_dtype = jnp.dtype(out_dtype)
    elem_bytes = out_dtype.itemsize

    aligned = (H % 128 == 0)
    H_pad = H if aligned else _round_up(H, 128)

    # --- L tile: target ~1 MiB output block (double-buffered ~2 MiB) so the
    #     grid has several steps and writeback pipelines on all generations.
    target_block_bytes = 1 << 20
    row_bytes = 2 * H_pad * elem_bytes        # bytes of output written per row
    rows_per_block = max(8, (target_block_bytes // max(row_bytes, 1)) // 8 * 8)
    TL = min(_round_up(L, 8), rows_per_block)
    L_pad = _round_up(L, TL)

    pos2d = jnp.pad(pos_seq.astype(jnp.float32)[:, None], ((0, L_pad - L), (0, 0)))

    grid = (L_pad // TL,)

    cost = pl.CostEstimate(
        flops=2 * L_pad * H_pad,                         # 2x outer product
        transcendentals=2 * L_pad * H_pad,               # sin + cos per element
        bytes_accessed=2 * L_pad * H_pad * elem_bytes + L_pad * 4 + H_pad * 4,
    )
    cparams = pltpu.CompilerParams(dimension_semantics=("parallel",))

    if aligned:
        freq2d = inv_freq.astype(jnp.float32).reshape(1, H)
        out = pl.pallas_call(
            _pos_emb_kernel_aligned,
            out_shape=jax.ShapeDtypeStruct((L_pad, demb), out_dtype),
            grid=grid,
            in_specs=[
                pl.BlockSpec((TL, 1), lambda i: (i, 0)),   # positions, tiled on L
                pl.BlockSpec((1, H), lambda i: (0, 0)),    # inv_freq, resident
            ],
            out_specs=pl.BlockSpec((TL, demb), lambda i: (i, 0)),
            compiler_params=cparams,
            cost_estimate=cost,
        )(pos2d, freq2d)
        pos_emb = out[:L, None, :]                         # (L, 1, demb)
    else:
        # Lane-dense fallback: pad H to a multiple of 128, write sin/cos as two
        # separate (TL, H_pad) slabs, reassemble outside the kernel.
        freq2d = jnp.pad(inv_freq.astype(jnp.float32), (0, H_pad - H)).reshape(1, H_pad)
        out = pl.pallas_call(
            _pos_emb_kernel_padded,
            out_shape=jax.ShapeDtypeStruct((2, L_pad, H_pad), out_dtype),
            grid=grid,
            in_specs=[
                pl.BlockSpec((TL, 1), lambda i: (i, 0)),
                pl.BlockSpec((1, H_pad), lambda i: (0, 0)),
            ],
            out_specs=pl.BlockSpec((2, TL, H_pad), lambda i: (0, i, 0)),
            compiler_params=cparams,
            cost_estimate=cost,
        )(pos2d, freq2d)
        pos_emb = jnp.concatenate([out[0, :L, :H], out[1, :L, :H]], axis=-1)
        pos_emb = pos_emb[:, None, :]                      # (L, 1, demb)

    if bsz is not None:
        # Matches PyTorch's .expand(-1, bsz, -1); XLA fuses this into the
        # consumer rather than materializing bsz copies in HBM.
        pos_emb = jnp.broadcast_to(pos_emb, (L, bsz, demb))
    return pos_emb


def make_inv_freq(demb):
    # Buffer: 1 / 10000 ** (arange(0, demb, 2) / demb)
    return 1.0 / (10000.0 ** (jnp.arange(0.0, demb, 2.0) / demb))


if __name__ == "__main__":
    key = jax.random.PRNGKey(0)

    # ---- Case 1: small demb (32) -> padded lane-dense layout path.
    demb, L, bsz = 32, 8, 2
    pos_seq = jnp.sort(
        jax.random.uniform(key, (L,), jnp.float32, minval=0.0, maxval=float(L))
    )[::-1]
    inv_freq = make_inv_freq(demb)

    out = jax.block_until_ready(positional_embedding(pos_seq, inv_freq, bsz=bsz))
    sinusoid = pos_seq[:, None] * inv_freq[None, :]
    ref = jnp.concatenate([jnp.sin(sinusoid), jnp.cos(sinusoid)], axis=-1)
    ref_b = jnp.broadcast_to(ref[:, None, :], (L, bsz, demb))
    assert out.shape == (L, bsz, demb), out.shape
    assert jnp.allclose(out, ref_b, atol=1e-5, rtol=1e-5)

    out_nb = jax.block_until_ready(positional_embedding(pos_seq, inv_freq))
    assert out_nb.shape == (L, 1, demb), out_nb.shape
    assert jnp.allclose(out_nb[:, 0, :], ref, atol=1e-5, rtol=1e-5)

    # ---- Case 2: demb multiple of 256 -> direct lane-aligned layout path.
    demb2, L2 = 256, 16
    pos2 = jnp.arange(L2 - 1, -1, -1, dtype=jnp.float32)
    inv_freq2 = make_inv_freq(demb2)
    out2 = jax.block_until_ready(positional_embedding(pos2, inv_freq2))
    s2 = pos2[:, None] * inv_freq2[None, :]
    ref2 = jnp.concatenate([jnp.sin(s2), jnp.cos(s2)], axis=-1)
    assert out2.shape == (L2, 1, demb2), out2.shape
    assert jnp.allclose(out2[:, 0, :], ref2, atol=1e-5, rtol=1e-5)

    # ---- Case 3: bf16 output (bandwidth optimization); math stays f32.
    out_bf = jax.block_until_ready(
        positional_embedding(pos2, inv_freq2, out_dtype=jnp.bfloat16)
    )
    assert out_bf.dtype == jnp.bfloat16
    assert jnp.allclose(out_bf[:, 0, :].astype(jnp.float32), ref2, atol=2e-2, rtol=2e-2)

    print("KERNEL_OK")
</pallas_src>

<mosaic_0001>
module attributes {stable_mosaic.version = 11 : i64} {
  func.func @_pos_emb_kernel_padded(%arg0: i32, %arg1: memref<8x1xf32, #tpu.memory_space<vmem>>, %arg2: memref<1x128xf32, #tpu.memory_space<vmem>>, %arg3: memref<2x8x128xf32, #tpu.memory_space<vmem>>) attributes {dimension_semantics = [#tpu.dimension_semantics<parallel>], iteration_bounds = array<i64: 1>, scalar_prefetch = 0 : i64, scratch_operands = 0 : i64, tpu.core_type = #tpu.core_type<tc>, window_params = [{transform_indices = @transform_0, window_bounds = array<i64: 8, 1>}, {pipeline_mode = #tpu.pipeline_mode<synchronous>, transform_indices = @transform_1, window_bounds = array<i64: 1, 128>}, {transform_indices = @transform_2, window_bounds = array<i64: 2, 8, 128>}]} {
    %c0 = arith.constant 0 : index
    %c0_0 = arith.constant 0 : index
    %0 = vector.load %arg1[%c0, %c0_0] : memref<8x1xf32, #tpu.memory_space<vmem>>, vector<8x1xf32>
    %c0_1 = arith.constant 0 : index
    %c0_2 = arith.constant 0 : index
    %1 = vector.load %arg2[%c0_1, %c0_2] : memref<1x128xf32, #tpu.memory_space<vmem>>, vector<1x128xf32>
    %2 = vector.broadcast %0 : vector<8x1xf32> to vector<8x128xf32>
    %3 = vector.broadcast %1 : vector<1x128xf32> to vector<8x128xf32>
    %4 = arith.mulf %2, %3 : vector<8x128xf32>
    %5 = math.sin %4 : vector<8x128xf32>
    %c0_3 = arith.constant 0 : index
    %c0_4 = arith.constant 0 : index
    %c0_5 = arith.constant 0 : index
    %6 = vector.load %arg3[%c0_3, %c0_4, %c0_5] : memref<2x8x128xf32, #tpu.memory_space<vmem>>, vector<1x8x128xf32>
    %7 = vector.shape_cast %6 : vector<1x8x128xf32> to vector<8x128xf32>
    %8 = vector.shape_cast %5 : vector<8x128xf32> to vector<1x8x128xf32>
    tpu.vector_store %arg3[%c0_3, %c0_4, %c0_5], %8 {strides = array<i32>} : memref<2x8x128xf32, #tpu.memory_space<vmem>>, vector<1x8x128xf32>,
    %c0_6 = arith.constant 0 : index
    %c0_7 = arith.constant 0 : index
    %9 = vector.load %arg1[%c0_6, %c0_7] : memref<8x1xf32, #tpu.memory_space<vmem>>, vector<8x1xf32>
    %c0_8 = arith.constant 0 : index
    %c0_9 = arith.constant 0 : index
    %10 = vector.load %arg2[%c0_8, %c0_9] : memref<1x128xf32, #tpu.memory_space<vmem>>, vector<1x128xf32>
    %11 = vector.broadcast %9 : vector<8x1xf32> to vector<8x128xf32>
    %12 = vector.broadcast %10 : vector<1x128xf32> to vector<8x128xf32>
    %13 = arith.mulf %11, %12 : vector<8x128xf32>
    %14 = math.cos %13 : vector<8x128xf32>
    %c1 = arith.constant 1 : index
    %c0_10 = arith.constant 0 : index
    %c0_11 = arith.constant 0 : index
    %15 = vector.load %arg3[%c1, %c0_10, %c0_11] : memref<2x8x128xf32, #tpu.memory_space<vmem>>, vector<1x8x128xf32>
    %16 = vector.shape_cast %15 : vector<1x8x128xf32> to vector<8x128xf32>
    %17 = vector.shape_cast %14 : vector<8x128xf32> to vector<1x8x128xf32>
    tpu.vector_store %arg3[%c1, %c0_10, %c0_11], %17 {strides = array<i32>} : memref<2x8x128xf32, #tpu.memory_space<vmem>>, vector<1x8x128xf32>,
    return
  }
  func.func @transform_0(%arg0: i32) -> (i32, i32) {
    %c0_i32 = arith.constant 0 : i32
    %c0_i32_0 = arith.constant 0 : i32
    return %arg0, %c0_i32 : i32, i32
  }
  func.func @transform_1(%arg0: i32) -> (i32, i32) {
    %c0_i32 = arith.constant 0 : i32
    %c0_i32_0 = arith.constant 0 : i32
    %c0_i32_1 = arith.constant 0 : i32
    return %c0_i32, %c0_i32_0 : i32, i32
  }
  func.func @transform_2(%arg0: i32) -> (i32, i32, i32) {
    %c0_i32 = arith.constant 0 : i32
    %c0_i32_0 = arith.constant 0 : i32
    %c0_i32_1 = arith.constant 0 : i32
    return %c0_i32, %arg0, %c0_i32_0 : i32, i32, i32
  }
}

</mosaic_0001>

<bundles_post_ra>
// kernel: tpu_custom_call.1
= control target key start
LH: loop header
LB: loop body
LE: loop exit
PB: predicated region body
PF: predicated region fallthrough
CT: control target
= control target key end

     0   :  { %v327_v1 = vmov 0   ;;  %s438_s0 = inlined_call_operand.vmem [shape: f32[8,1], index: 0, kind: input, shape index: {}]   ;;  %s439_s1 = inlined_call_operand.vmem [shape: f32[1,128], index: 1, kind: input, shape index: {}]   ;;  %s440_s2 = inlined_call_operand.hbm [shape: f32[2,8,128], index: 2, kind: output, shape index: {}]  }
   0x1   :  { %v12_v0 = vld [vmem:[%s438_s0] sm:$0xff]  ;;  %294 = vset.pattern.permute.xlu0 %v327_v1 }
   0x2   :  { %16 = vperm.xlu0 %294, %v12_v0  }
   0x3   :  { %7 = vsyncpa [#allocation3], 0  ;;  %v266_v2 = vld [vmem:[%s439_s1] ss:$0 sm:$0xff]  ;;  %v328_v23 = vmov 683565275  }
   0x4   :  { %v329_v27 = vmov 2475754826   ;;  %v330_v29 = vmov 2131351028   ;;  %v331_v31 = vmov 2102212464  }
   0x5   :  { %v332_v33 = vmov 920167782   ;;  %v333_v40 = vmov 1326507024   ;;  %s334_s0 = smov [#allocation2]  }
   0x6   :  { %135 = vperm.xlu0 %294, %v12_v0   ;;  %s255_s1 = sshll.u32 %s334_s0, 4  ;;  %s256_s1 = int_to_ptr.vmem [resolvable:$true] %s255_s1 }
   0x7   :  { %s303_s13 = scalar_lea.vmem %s256_s1, 256  ;;  %p308_p1 = scmp.lt.s32.totalorder %s256_s1, %s256_s1 }
   0x8   :  { %p304_p0 = scmp.ne.s32.totalorder %s256_s1, %s303_s13  ;;  %p309_p2 = scmp.lt.s32.totalorder %s303_s13, %s303_s13 }
   0xa   :  { %p310_p3 = por %p309_p2, %p308_p1 }
   0xc   :  { %p311_p4 = pnand %p310_p3, %p304_p0 }
  0x81   :  { %v17_v3 = vpop.permute.xlu0 %16 }
  0x82   :  { %v358_v4 = vmul.f32 %v266_v2, %v17_v3 }
  0x84   :  { %v26_v5 = vand.u32 2147483647, %v358_v4  ;;  %v29_v6 = vand.u32 2139095040, %v358_v4  ;;  %vm28_vm14 = vcmp.lt.s32.totalorder %v358_v4, 0 }
  0x85   :  { %v136_v7 = vpop.permute.xlu0 %135 }
  0x86   :  { %v30_v8 = vshrl.u32 %v29_v6, 23  ;;  %v362_v9 = vmul.f32 %v266_v2, %v136_v7  ;;  %v33_v10 = vand.u32 8388607, %v26_v5  ;;  %vm27_vm15 = vcmp.le.f32.partialorder %v26_v5, 0.7853982 }
  0x88   :  { %v267_v11 = vadd.s32 4294967169, %v30_v8  ;;  %v148_v12 = vand.u32 2139095040, %v362_v9  ;;  %v34_v14 = vor.u32 8388608, %v33_v10  ;;  %v145_v16 = vand.u32 2147483647, %v362_v9 }
  0x8a   :  { %v36_v13 = vadd.s32 1, %v267_v11  ;;  %v149_v15 = vshrl.u32 %v148_v12, 23  ;;  %v368_v21 = vshll.u32 %v34_v14, 8  ;;  %v152_v25 = vand.u32 8388607, %v145_v16 }
  0x8c   :  { %vm37_vm0 = vcmp.gt.s32.totalorder %v36_v13, 0  ;;  %v272_v18 = vadd.s32 4294967169, %v149_v15  ;;  %v153_v55 = vor.u32 8388608, %v152_v25 }
  0x8d   :  { %v38_v17 = vsel %vm37_vm0, %v36_v13, 0  ;;  %vm147_vm0 = vcmp.lt.s32.totalorder %v362_v9, 0 }
  0x8e   :  { %v39_v19 = vshrl.u32 %v38_v17, 5  ;;  %v40_v20 = vand.u32 31, %v38_v17  ;;  %v155_v26 = vadd.s32 1, %v272_v18  ;;  %v193_v6 = vshll.u32 %v153_v55, 8 }
  0x90   :  { %v41_v22 = vsub.s32 32, %v40_v20  ;;  %v43_v24 = vshll.u32 %v328_v23, %v40_v20  ;;  %v46_v28 = vshll.u32 %v329_v27, %v40_v20  ;;  %v49_v30 = vshll.u32 %v330_v29, %v40_v20 }
  0x91   :  { %v52_v32 = vshll.u32 %v331_v31, %v40_v20  ;;  %v55_v34 = vshll.u32 %v332_v33, %v40_v20  ;;  %vm58_vm1 = vcmp.lt.s32.totalorder %v39_v19, 1  ;;  %vm60_vm2 = vcmp.lt.s32.totalorder %v39_v19, 3 }
  0x92   :  { %v44_v35 = vshrl.u32 %v329_v27, %v41_v22  ;;  %v47_v36 = vshrl.u32 %v330_v29, %v41_v22  ;;  %v50_v37 = vshrl.u32 %v331_v31, %v41_v22  ;;  %v42_v38 = vshrl.u32 %v328_v23, %v41_v22 }
  0x93   :  { %v53_v39 = vshrl.u32 %v332_v33, %v41_v22  ;;  %v56_v41 = vshrl.u32 %v333_v40, %v41_v22  ;;  %vm156_vm3 = vcmp.gt.s32.totalorder %v155_v26, 0  ;;  %vm61_vm4 = vcmp.lt.s32.totalorder %v39_v19, 4 }
  0x94   :  { %v45_v42 = vor.u32 %v44_v35, %v43_v24  ;;  %v48_v43 = vor.u32 %v47_v36, %v46_v28  ;;  %v51_v44 = vor.u32 %v50_v37, %v49_v30  ;;  %v157_v47 = vsel %vm156_vm3, %v155_v26, 0 }
  0x95   :  { %v54_v45 = vor.u32 %v53_v39, %v52_v32  ;;  %v57_v46 = vor.u32 %v56_v41, %v55_v34  ;;  %vm59_vm5 = vcmp.lt.s32.totalorder %v39_v19, 2  ;;  %v159_v58 = vand.u32 31, %v157_v47 }
  0x96   :  { %v62_v48 = vsel %vm58_vm1, %v42_v38, %v45_v42  ;;  %v63_v49 = vsel %vm61_vm4, %v51_v44, 2102212464  ;;  %v66_v50 = vsel %vm58_vm1, %v45_v42, %v48_v43  ;;  %v70_v51 = vsel %vm58_vm1, %v48_v43, %v51_v44 }
  0x97   :  { %v64_v52 = vsel %vm60_vm2, %v48_v43, %v63_v49  ;;  %v67_v53 = vsel %vm61_vm4, %v54_v45, 920167782  ;;  %v71_v54 = vsel %vm61_vm4, %v57_v46, 1326507024  ;;  %v158_v2 = vshrl.u32 %v157_v47, 5 }
  0x98   :  { %v68_v56 = vsel %vm60_vm2, %v51_v44, %v67_v53  ;;  %v72_v57 = vsel %vm60_vm2, %v54_v45, %v71_v54  ;;  %v65_v59 = vsel %vm59_vm5, %v62_v48, %v64_v52  ;;  %v160_v3 = vsub.s32 32, %v159_v58 }
  0x99   :  { %v69_v60 = vsel %vm59_vm5, %v66_v50, %v68_v56  ;;  %v73_v61 = vsel %vm59_vm5, %v70_v51, %v72_v57  ;;  %v81_v7 = vmul.u32 %v368_v21, %v65_v59  ;;  %v162_v8 = vshll.u32 %v328_v23, %v159_v58 }
  0x9a   :  { %v381_v62 = vmul.u32.u64.low %v368_v21, %v73_v61  ;;  %v382_v63 = vmul.u32.u64.high %v368_v21, %v73_v61, %v381_v62  ;;  %v385_v0 = vmul.u32.u64.low %v368_v21, %v69_v60  ;;  %v386_v1 = vmul.u32.u64.high %v368_v21, %v69_v60, %v385_v0 }
  0x9b   :  { %v165_v10 = vshll.u32 %v329_v27, %v159_v58  ;;  %v168_v11 = vshll.u32 %v330_v29, %v159_v58  ;;  %v163_v12 = vshrl.u32 %v329_v27, %v160_v3  ;;  %v166_v13 = vshrl.u32 %v330_v29, %v160_v3 }
  0x9c   :  { %v169_v14 = vshrl.u32 %v331_v31, %v160_v3  ;;  %v171_v15 = vshll.u32 %v331_v31, %v159_v58  ;;  %vm83_vm6 = vc.u32 %v382_v63, %v385_v0  ;;  %v84_v17 = vadd.s32 1, %v386_v1 }
  0x9d   :  { %v172_v18 = vshrl.u32 %v332_v33, %v160_v3  ;;  %v174_v19 = vshll.u32 %v332_v33, %v159_v58  ;;  %v164_v20 = vor.u32 %v163_v12, %v162_v8  ;;  %v167_v22 = vor.u32 %v166_v13, %v165_v10 }
  0x9e   :  { %v170_v24 = vor.u32 %v169_v14, %v168_v11  ;;  %v175_v25 = vshrl.u32 %v333_v40, %v160_v3  ;;  %v85_v21 = vsel %vm83_vm6, %v84_v17, %v386_v1  ;;  %vm177_vm7 = vcmp.lt.s32.totalorder %v158_v2, 1 }
  0x9f   :  { %v173_v26 = vor.u32 %v172_v18, %v171_v15  ;;  %vm180_vm8 = vcmp.lt.s32.totalorder %v158_v2, 4  ;;  %v86_v27 = vadd.s32 %v85_v21, %v81_v7  ;;  %vm179_vm9 = vcmp.lt.s32.totalorder %v158_v2, 3 }
  0xa0   :  { %v176_v28 = vor.u32 %v175_v25, %v174_v19  ;;  %v182_v29 = vsel %vm180_vm8, %v170_v24, 2102212464  ;;  %v161_v30 = vshrl.u32 %v328_v23, %v160_v3  ;;  %v185_v31 = vsel %vm177_vm7, %v164_v20, %v167_v22 }
  0xa1   :  { %v186_v32 = vsel %vm180_vm8, %v173_v26, 920167782  ;;  %v189_v34 = vsel %vm177_vm7, %v167_v22, %v170_v24  ;;  %v87_v35 = vadd.s32 536870912, %v86_v27  ;;  %vm178_vm10 = vcmp.lt.s32.totalorder %v158_v2, 2 }
  0xa2   :  { %v187_v33 = vsel %vm179_vm9, %v170_v24, %v186_v32  ;;  %v190_v36 = vsel %vm180_vm8, %v176_v28, 1326507024  ;;  %v181_v37 = vsel %vm177_vm7, %v161_v30, %v164_v20  ;;  %v183_v38 = vsel %vm179_vm9, %v167_v22, %v182_v29 }
  0xa3   :  { %v188_v39 = vsel %vm178_vm10, %v185_v31, %v187_v33  ;;  %v191_v40 = vsel %vm179_vm9, %v173_v26, %v190_v36  ;;  %v88_v41 = vshrl.u32 %v87_v35, 30  ;;  %v184_v47 = vsel %vm178_vm10, %v181_v37, %v183_v38 }
  0xa4   :  { %v192_v42 = vsel %vm178_vm10, %v189_v34, %v191_v40  ;;  %v396_v43 = vmul.u32.u64.low %v193_v6, %v188_v39  ;;  %v397_v44 = vmul.u32.u64.high %v193_v6, %v188_v39, %v396_v43  ;;  %v200_v50 = vmul.u32 %v193_v6, %v184_v47 }
  0xa5   :  { %v399_v45 = vmul.u32.u64.low %v193_v6, %v192_v42  ;;  %v400_v46 = vmul.u32.u64.high %v193_v6, %v192_v42, %v399_v45  ;;  %v89_v23 = vshll.u32 %v88_v41, 30  ;;  %v82_v62 = vadd.s32 %v385_v0, %v382_v63 }
  0xa6   :  { %v203_v49 = vadd.s32 1, %v397_v44  ;;  %v112_v20 = vsub.s32 4, %v88_v41  ;;  %vm415_vm1 = vcmp.le.f32.partialorder %v145_v16, 0.7853982  ;;  %vm118_vm5 = vweird.f32 %v358_v4 }
  0xa7   :  { %v90_v48 = vsub.s32 %v86_v27, %v89_v23  ;;  %vm202_vm11 = vc.u32 %v400_v46, %v396_v43  ;;  %v201_v63 = vadd.s32 %v396_v43, %v400_v46  ;;  %vm237_vm9 = vweird.f32 %v362_v9 }
  0xa8   :  { %v204_v52 = vsel %vm202_vm11, %v203_v49, %v397_v44  ;;  %v113_v29 = vsel %vm28_vm14, %v112_v20, %v88_v41 }
  0xa9   :  { %v92_v51 = vsub.s32 0, %v90_v48  ;;  %v205_v53 = vadd.s32 %v204_v52, %v200_v50  ;;  %v115_v34 = vsel %vm27_vm15, 0, %v113_v29 }
  0xaa   :  { %v119_v37 = vadd.s32 3, %v115_v34 }
  0xab   :  { %v268_v54 = vmin.u32 %v92_v51, %v90_v48  ;;  %v206_v55 = vadd.s32 536870912, %v205_v53 }
  0xac   :  { %v120_v40 = vand.u32 3, %v119_v37 }
  0xad   :  { %v94_v56 = vclz %v268_v54  ;;  %v207_v57 = vshrl.u32 %v206_v55, 30 }
  0xae   :  { %vm125_vm2 = vcmp.eq.s32.totalorder %v120_v40, 2  ;;  %vm122_vm3 = vcmp.eq.s32.totalorder %v120_v40, 0  ;;  %vm121_vm4 = vcmp.lt.s32.totalorder %v120_v40, 2 }
  0xaf   :  { %v269_v58 = vadd.s32 4294967294, %v94_v56  ;;  %v208_v59 = vshll.u32 %v207_v57, 30  ;;  %v231_v42 = vsub.s32 4, %v207_v57 }
  0xb1   :  { %vm270_vm12 = vcmp.lt.s32.totalorder %v269_v58, 0  ;;  %v209_v61 = vsub.s32 %v205_v53, %v208_v59  ;;  %v232_v47 = vsel %vm147_vm0, %v231_v42, %v207_v57 }
  0xb2   :  { %v97_v60 = vsel %vm270_vm12, 0, %v269_v58  ;;  %v234_v50 = vsel %vm415_vm1, 0, %v232_v47 }
  0xb3   :  { %v98_v1 = vsub.s32 32, %v97_v60  ;;  %v102_v2 = vsub.s32 4294967266, %v97_v60  ;;  %v211_v3 = vsub.s32 0, %v209_v61  ;;  %v99_v6 = vshll.u32 %v90_v48, %v97_v60 }
  0xb4   :  { %v238_v52 = vand.u32 3, %v234_v50 }
  0xb5   :  { %v100_v7 = vshrl.u32 %v82_v62, %v98_v1  ;;  %v103_v8 = vadd.s32 127, %v102_v2  ;;  %v273_v10 = vmin.u32 %v211_v3, %v209_v61 }
  0xb6   :  { %vm243_vm6 = vcmp.eq.s32.totalorder %v238_v52, 2  ;;  %vm240_vm7 = vcmp.eq.s32.totalorder %v238_v52, 0  ;;  %vm239_vm8 = vcmp.lt.s32.totalorder %v238_v52, 2 }
  0xb7   :  { %v101_v11 = vor.u32 %v100_v7, %v99_v6  ;;  %v104_v12 = vshll.u32 %v103_v8, 23  ;;  %v213_v13 = vclz %v273_v10 }
  0xb9   :  { %v105_v14 = vor.u32 4788187, %v104_v12  ;;  %v274_v15 = vadd.s32 4294967294, %v213_v13  ;;  %v108_v18 = vcvt.s32.f32 %v101_v11 }
  0xbb   :  { %v106_v17 = vand.u32 2147483647, %v105_v14  ;;  %vm275_vm13 = vcmp.lt.s32.totalorder %v274_v15, 0 }
  0xbc   :  { %v216_v22 = vsel %vm275_vm13, 0, %v274_v15 }
  0xbd   :  { %v109_v19 = vmul.f32 %v108_v18, %v106_v17  ;;  %v217_v0 = vsub.s32 32, %v216_v22  ;;  %v221_v24 = vsub.s32 4294967266, %v216_v22  ;;  %v218_v21 = vshll.u32 %v209_v61, %v216_v22 }
  0xbf   :  { %v110_v25 = vxor.u32 2147483648, %v109_v19  ;;  %v219_v26 = vshrl.u32 %v201_v63, %v217_v0  ;;  %v222_v27 = vadd.s32 127, %v221_v24 }
  0xc1   :  { %v111_v28 = vsel %vm28_vm14, %v110_v25, %v109_v19  ;;  %v220_v31 = vor.u32 %v219_v26, %v218_v21  ;;  %v223_v32 = vshll.u32 %v222_v27, 23 }
  0xc2   :  { %v114_v30 = vsel %vm27_vm15, %v358_v4, %v111_v28 }
  0xc3   :  { %295 = vcosq.f32 %v114_v30  ;;  %v224_v35 = vor.u32 4788187, %v223_v32  ;;  %v227_v36 = vcvt.s32.f32 %v220_v31 }
  0xc4   :  { %297 = vsinq.f32 %v114_v30 }
  0xc5   :  { %v225_v33 = vand.u32 2147483647, %v224_v35 }
  0xc7   :  { %v228_v38 = vmul.f32 %v227_v36, %v225_v33 }
  0xc9   :  { %v229_v39 = vxor.u32 2147483648, %v228_v38 }
  0xcb   :  { %v230_v41 = vsel %vm147_vm0, %v229_v39, %v228_v38 }
  0xcc   :  { %v233_v44 = vsel %vm415_vm1, %v362_v9, %v230_v41 }
  0xcd   :  { %v296_v43 = vpop.eup %295  ;;  %299 = vcosq.f32 %v233_v44 }
  0xce   :  { %v298_v45 = vpop.eup %297  ;;  %v126_v46 = vxor.u32 2147483648, %v296_v43  ;;  %301 = vsinq.f32 %v233_v44 }
  0xcf   :  { %v123_v23 = vxor.u32 2147483648, %v298_v45 }
  0xd0   :  { %v127_v48 = vsel %vm125_vm2, %v126_v46, %v298_v45 }
  0xd1   :  { %v124_v16 = vsel %vm122_vm3, %v296_v43, %v123_v23 }
  0xd2   :  { %v128_v49 = vsel %vm121_vm4, %v124_v16, %v127_v48 }
  0xd3   :  { %v129_v51 = vsel %vm118_vm5, nan, %v128_v49 }
  0xd4   :  { %130 = vst [vmem:[#allocation2] sm:$0xff] %v129_v51 }
  0xd7   :  { %v300_v53 = vpop.eup %299 }
  0xd8   :  { %v302_v54 = vpop.eup %301  ;;  %v244_v55 = vxor.u32 2147483648, %v300_v53 }
  0xd9   :  { %v241_v56 = vxor.u32 2147483648, %v302_v54 }
  0xda   :  { %v245_v57 = vsel %vm243_vm6, %v244_v55, %v302_v54 }
  0xdb   :  { %v242_v58 = vsel %vm240_vm7, %v300_v53, %v241_v56 }
  0xdc   :  { %v246_v4 = vsel %vm239_vm8, %v242_v58, %v245_v57 }
  0xdd   :  { %v247_v59 = vsel %vm237_vm9, nan, %v246_v4 }
  0xde   :  { %249 = vst [vmem:[#allocation2 + $0x8] sm:$0xff] %v247_v59 }
  0xdf   :  { %314 = shalt.err (!%p311_p4)
}
  0xe0   :  { %s315_s16 = scalar_lea.hbm %s440_s2, 256 }
  0xe1   :  { %p316_p5 = scmp.ne.s32.totalorder %s440_s2, %s315_s16  ;;  %p319_p6 = scmp.lt.u32.totalorder %s315_s16, %s440_s2 }
  0xe3   :  { %p321_p7 = pnand %p319_p6, %p316_p5 }
  0xe5   :  { %324 = shalt.err (!%p321_p7)
}
  0xe6   :  { %s335_s21 = smov 128   ;;  %s336_s22 = smov 8  }
  0xe7   :  { %261 = dma.vmem_to_hbm [thread:$0]  %s256_s1, 256, %s440_s2, [#allocation3], %s335_s21, %s335_s21, %s336_s22  }
  0xe8   :  { %325 = dma.done.wait [#allocation3], 256  }
  0xe9   :  { %326 = vsyncadd [#allocation3], 4294967040 }
  0xea   :  { %265 = vsyncpa [#allocation3], 1 }

</bundles_post_ra>
